<compile_context>
chip_gen: v7x
topology: tpu7x:2x2x1
jax: 0.10.0
libtpu: 0.0.40
codegen_flags: <defaults>
</compile_context>

<pallas_src>
import functools

import jax
import jax.numpy as jnp
from jax.experimental import pallas as pl
from jax.experimental.pallas import tpu as pltpu


def _round_up(x, m):
    return (x + m - 1) // m * m


def _spatial_tiling(hw, max_sublanes):
    """Split hw pixels into n_tiles tiles of (s_tile, 128) with minimal padding."""
    n_rows = -(-hw // 128)                 # number of 128-lane rows of pixels
    n_rows8 = _round_up(n_rows, 8)         # sublane alignment
    n_tiles = -(-n_rows8 // max_sublanes)
    s_tile = _round_up(-(-n_rows8 // n_tiles), 8)
    n_rows_pad = s_tile * n_tiles
    return s_tile, n_tiles, n_rows_pad


def _color_loss_kernel(t_ref, p_ref, o_ref, acc1, acc2, csum, *, hw):
    """Per grid step: one batch element (axis 0, parallel) x one hw tile (axis 1)."""
    j = pl.program_id(1)
    last_j = pl.num_programs(1) - 1

    # Reset the per-batch accumulators at the first spatial tile of each batch.
    @pl.when(j == 0)
    def _init():
        acc1[...] = jnp.zeros_like(acc1)
        acc2[...] = jnp.zeros_like(acc2)
        csum[...] = jnp.zeros_like(csum)

    # Blocks are (1, 3, s_tile, 128); pull the 3 channel planes as (s_tile, 128).
    xr = t_ref[0, 0].astype(jnp.float32)
    xg = t_ref[0, 1].astype(jnp.float32)
    xb = t_ref[0, 2].astype(jnp.float32)
    yr = p_ref[0, 0].astype(jnp.float32)
    yg = p_ref[0, 1].astype(jnp.float32)
    yb = p_ref[0, 2].astype(jnp.float32)

    # Per-pixel channel inner products (3 VPU FMAs each, no cross-lane work).
    xx = xr * xr + xg * xg + xb * xb
    yy = yr * yr + yg * yg + yb * yb
    xy = xr * yr + xg * yg + xb * yb

    # ArcMarginProduct.forward: cosine similarity with F.normalize eps clamping.
    eps = jnp.float32(1e-12)
    cos = xy / (jnp.maximum(jnp.sqrt(xx), eps) * jnp.maximum(jnp.sqrt(yy), eps))
    acc1[...] += jnp.float32(1.0) - cos

    # MSE (sum of squared errors), fused from the terms already computed.
    acc2[...] += xx + yy - jnp.float32(2.0) * xy

    # L_color: accumulate per-channel pixel sums of the prediction.
    csum[0] = csum[0] + yr
    csum[1] = csum[1] + yg
    csum[2] = csum[2] + yb

    # Finalize this batch element: single cross-lane/sublane reduce per batch.
    @pl.when(j == last_j)
    def _finalize():
        def _reduce(v):                                    # (s_tile, 128) -> (1, 1)
            return jnp.sum(jnp.sum(v, axis=1, keepdims=True), axis=0, keepdims=True)

        s1 = _reduce(acc1[...])                            # sum(1 - cos) incl. padding
        s2 = _reduce(acc2[...])                            # sum((x - y)^2)

        inv_hw = jnp.float32(1.0 / hw)                     # real pixel count
        mr = _reduce(csum[0]) * inv_hw
        mg = _reduce(csum[1]) * inv_hw
        mb = _reduce(csum[2]) * inv_hw
        drg = (mr - mg) ** 2
        drb = (mr - mb) ** 2
        dgb = (mb - mg) ** 2
        k = jnp.sqrt(drg * drg + drb * drb + dgb * dgb)    # (1, 1)

        # Pack (s1, s2, k) into lanes 0..2 of an (8, 128) tile with one full store.
        lane = jax.lax.broadcasted_iota(jnp.int32, (8, 128), 1)
        vals = jnp.where(lane == 0, s1,
               jnp.where(lane == 1, s2,
               jnp.where(lane == 2, k, jnp.float32(0.0))))
        o_ref[0] = vals


@functools.partial(jax.jit, static_argnames=("max_sublanes",))
def color_loss_angular(ture_reflect, pred_reflect, *, max_sublanes=1024):
    b, c, h, w = ture_reflect.shape
    assert c == 3, "L_color splits the channel axis into (r, g, b); c must be 3"
    hw = h * w

    s_tile, n_tiles, n_rows_pad = _spatial_tiling(hw, max_sublanes)
    hw_pad = n_rows_pad * 128
    n_pad = hw_pad - hw            # zero-padded pixels per batch element

    def relayout(x):
        # Keep the native dtype (bf16 stays bf16 -> half the HBM traffic);
        # cast to f32 inside the kernel.
        x = x.reshape(b, c, hw)
        if n_pad:
            x = jnp.pad(x, ((0, 0), (0, 0), (0, n_pad)))
        return x.reshape(b, c, n_rows_pad, 128)

    t = relayout(ture_reflect)
    p = relayout(pred_reflect)

    kernel = functools.partial(_color_loss_kernel, hw=hw)

    partials = pl.pallas_call(
        kernel,
        out_shape=jax.ShapeDtypeStruct((b, 8, 128), jnp.float32),
        grid_spec=pltpu.PrefetchScalarGridSpec(
            num_scalar_prefetch=0,
            grid=(b, n_tiles),
            in_specs=[
                pl.BlockSpec((1, c, s_tile, 128), lambda i, j: (i, 0, j, 0)),
                pl.BlockSpec((1, c, s_tile, 128), lambda i, j: (i, 0, j, 0)),
            ],
            out_specs=pl.BlockSpec((1, 8, 128), lambda i, j: (i, 0, 0)),
            scratch_shapes=[
                pltpu.VMEM((s_tile, 128), jnp.float32),      # acc1: sum(1 - cos)
                pltpu.VMEM((s_tile, 128), jnp.float32),      # acc2: sum((x - y)^2)
                pltpu.VMEM((3, s_tile, 128), jnp.float32),   # csum: per-channel sums
            ],
        ),
        compiler_params=pltpu.CompilerParams(
            # batch axis is independent (scratch reset at j==0, per-batch output)
            # -> parallel (2x on v7x's two TensorCores); hw axis carries the
            # accumulators -> arbitrary.
            dimension_semantics=("parallel", "arbitrary")),
    )(t, p)

    per_b = partials[:, 0, :]                       # (b, 128): lanes 0..2 used
    # Zero-padded pixels contribute exactly (1 - cos) = 1 each; correct analytically.
    s1 = jnp.sum(per_b[:, 0]) - jnp.float32(b * n_pad)
    s2 = jnp.sum(per_b[:, 1])
    k_per_batch = per_b[:, 2]

    loss1 = s1 / jnp.float32(b * hw)                # mean over b*h*w pixels
    loss2 = s2 / jnp.float32(b * c * hw)            # mean over all elements
    loss3 = jnp.mean(k_per_batch)                   # mean of per-batch k
    return loss1 + loss2 + loss3


def _reference_loss(t, p):
    """Pure-JAX reference mirroring the PyTorch forward."""
    b, c, h, w = t.shape
    tf = t.astype(jnp.float32)
    pf = p.astype(jnp.float32)
    tv = tf.reshape(b, c, h * w).transpose(0, 2, 1)
    pv = pf.reshape(b, c, h * w).transpose(0, 2, 1)
    tn = tv / jnp.maximum(jnp.linalg.norm(tv, axis=-1, keepdims=True), 1e-12)
    pn = pv / jnp.maximum(jnp.linalg.norm(pv, axis=-1, keepdims=True), 1e-12)
    loss1 = jnp.mean(1.0 - jnp.sum(tn * pn, axis=-1))
    loss2 = jnp.mean((tf - pf) ** 2)
    mean_rgb = jnp.mean(pf, axis=(2, 3))                     # (b, 3)
    mr, mg, mb = mean_rgb[:, 0], mean_rgb[:, 1], mean_rgb[:, 2]
    Drg = (mr - mg) ** 2
    Drb = (mr - mb) ** 2
    Dgb = (mb - mg) ** 2
    k = jnp.sqrt(Drg ** 2 + Drb ** 2 + Dgb ** 2)
    loss3 = jnp.mean(k)
    return loss1 + loss2 + loss3


if __name__ == "__main__":
    key = jax.random.PRNGKey(0)
    k1, k2, k3, k4 = jax.random.split(key, 4)

    # Primary small test (NCHW RGB, as the PyTorch module expects).
    b, c, h, w = 2, 3, 16, 16
    ture_reflect = jax.random.uniform(k1, (b, c, h, w), jnp.float32)
    pred_reflect = jax.random.uniform(k2, (b, c, h, w), jnp.float32)

    out = color_loss_angular(ture_reflect, pred_reflect)
    out = jax.block_until_ready(out)
    ref = _reference_loss(ture_reflect, pred_reflect)
    assert jnp.allclose(out, ref, rtol=1e-5, atol=1e-5), (float(out), float(ref))

    # Secondary test: exercises the multi-tile spatial grid + padding path
    # (small max_sublanes forces several hw tiles per batch element).
    t2 = jax.random.uniform(k3, (2, 3, 48, 40), jnp.float32)
    p2 = jax.random.uniform(k4, (2, 3, 48, 40), jnp.float32)
    out2 = jax.block_until_ready(color_loss_angular(t2, p2, max_sublanes=8))
    ref2 = _reference_loss(t2, p2)
    assert jnp.allclose(out2, ref2, rtol=1e-5, atol=1e-5), (float(out2), float(ref2))

    print("KERNEL_OK")
</pallas_src>

<mosaic_0001>
module attributes {stable_mosaic.version = 11 : i64} {
  func.func @_color_loss_kernel(%arg0: i32, %arg1: i32, %arg2: memref<1x3x8x128xf32, #tpu.memory_space<vmem>>, %arg3: memref<1x3x8x128xf32, #tpu.memory_space<vmem>>, %arg4: memref<1x8x128xf32, #tpu.memory_space<vmem>>, %arg5: memref<8x128xf32, #tpu.memory_space<vmem>>, %arg6: memref<8x128xf32, #tpu.memory_space<vmem>>, %arg7: memref<3x8x128xf32, #tpu.memory_space<vmem>>) attributes {dimension_semantics = [#tpu.dimension_semantics<parallel>, #tpu.dimension_semantics<arbitrary>], iteration_bounds = array<i64: 2, 1>, scalar_prefetch = 0 : i64, scratch_operands = 3 : i64, tpu.core_type = #tpu.core_type<tc>, window_params = [{transform_indices = @transform_0, window_bounds = array<i64: 1, 3, 8, 128>}, {transform_indices = @transform_1, window_bounds = array<i64: 1, 3, 8, 128>}, {transform_indices = @transform_2, window_bounds = array<i64: 1, 8, 128>}]} {
    %c0_i32 = arith.constant 0 : i32
    %0 = arith.cmpi eq, %arg1, %c0_i32 : i32
    %1 = arith.extui %0 : i1 to i32
    %c0_i32_0 = arith.constant 0 : i32
    %2 = arith.cmpi ne, %1, %c0_i32_0 : i32
    scf.if %2 {
      %cst_53 = arith.constant 0.000000e+00 : f32
      %71 = vector.broadcast %cst_53 : f32 to vector<8x128xf32>
      %c0_54 = arith.constant 0 : index
      %c0_55 = arith.constant 0 : index
      %72 = vector.load %arg5[%c0_54, %c0_55] : memref<8x128xf32, #tpu.memory_space<vmem>>, vector<8x128xf32>
      tpu.vector_store %arg5[%c0_54, %c0_55], %71 {strides = array<i32>} : memref<8x128xf32, #tpu.memory_space<vmem>>, vector<8x128xf32>,
      %cst_56 = arith.constant 0.000000e+00 : f32
      %73 = vector.broadcast %cst_56 : f32 to vector<8x128xf32>
      %c0_57 = arith.constant 0 : index
      %c0_58 = arith.constant 0 : index
      %74 = vector.load %arg6[%c0_57, %c0_58] : memref<8x128xf32, #tpu.memory_space<vmem>>, vector<8x128xf32>
      tpu.vector_store %arg6[%c0_57, %c0_58], %73 {strides = array<i32>} : memref<8x128xf32, #tpu.memory_space<vmem>>, vector<8x128xf32>,
      %cst_59 = arith.constant 0.000000e+00 : f32
      %75 = vector.broadcast %cst_59 : f32 to vector<3x8x128xf32>
      %c0_60 = arith.constant 0 : index
      %c0_61 = arith.constant 0 : index
      %c0_62 = arith.constant 0 : index
      %76 = vector.load %arg7[%c0_60, %c0_61, %c0_62] : memref<3x8x128xf32, #tpu.memory_space<vmem>>, vector<3x8x128xf32>
      tpu.vector_store %arg7[%c0_60, %c0_61, %c0_62], %75 {strides = array<i32>} : memref<3x8x128xf32, #tpu.memory_space<vmem>>, vector<3x8x128xf32>,
    } else {
    }
    %c0 = arith.constant 0 : index
    %c0_1 = arith.constant 0 : index
    %c0_2 = arith.constant 0 : index
    %c0_3 = arith.constant 0 : index
    %3 = vector.load %arg2[%c0, %c0_1, %c0_2, %c0_3] : memref<1x3x8x128xf32, #tpu.memory_space<vmem>>, vector<1x1x8x128xf32>
    %4 = vector.shape_cast %3 : vector<1x1x8x128xf32> to vector<8x128xf32>
    %c0_4 = arith.constant 0 : index
    %c1 = arith.constant 1 : index
    %c0_5 = arith.constant 0 : index
    %c0_6 = arith.constant 0 : index
    %5 = vector.load %arg2[%c0_4, %c1, %c0_5, %c0_6] : memref<1x3x8x128xf32, #tpu.memory_space<vmem>>, vector<1x1x8x128xf32>
    %6 = vector.shape_cast %5 : vector<1x1x8x128xf32> to vector<8x128xf32>
    %c0_7 = arith.constant 0 : index
    %c2 = arith.constant 2 : index
    %c0_8 = arith.constant 0 : index
    %c0_9 = arith.constant 0 : index
    %7 = vector.load %arg2[%c0_7, %c2, %c0_8, %c0_9] : memref<1x3x8x128xf32, #tpu.memory_space<vmem>>, vector<1x1x8x128xf32>
    %8 = vector.shape_cast %7 : vector<1x1x8x128xf32> to vector<8x128xf32>
    %c0_10 = arith.constant 0 : index
    %c0_11 = arith.constant 0 : index
    %c0_12 = arith.constant 0 : index
    %c0_13 = arith.constant 0 : index
    %9 = vector.load %arg3[%c0_10, %c0_11, %c0_12, %c0_13] : memref<1x3x8x128xf32, #tpu.memory_space<vmem>>, vector<1x1x8x128xf32>
    %10 = vector.shape_cast %9 : vector<1x1x8x128xf32> to vector<8x128xf32>
    %c0_14 = arith.constant 0 : index
    %c1_15 = arith.constant 1 : index
    %c0_16 = arith.constant 0 : index
    %c0_17 = arith.constant 0 : index
    %11 = vector.load %arg3[%c0_14, %c1_15, %c0_16, %c0_17] : memref<1x3x8x128xf32, #tpu.memory_space<vmem>>, vector<1x1x8x128xf32>
    %12 = vector.shape_cast %11 : vector<1x1x8x128xf32> to vector<8x128xf32>
    %c0_18 = arith.constant 0 : index
    %c2_19 = arith.constant 2 : index
    %c0_20 = arith.constant 0 : index
    %c0_21 = arith.constant 0 : index
    %13 = vector.load %arg3[%c0_18, %c2_19, %c0_20, %c0_21] : memref<1x3x8x128xf32, #tpu.memory_space<vmem>>, vector<1x1x8x128xf32>
    %14 = vector.shape_cast %13 : vector<1x1x8x128xf32> to vector<8x128xf32>
    %15 = arith.mulf %4, %4 : vector<8x128xf32>
    %16 = arith.mulf %6, %6 : vector<8x128xf32>
    %17 = arith.addf %15, %16 : vector<8x128xf32>
    %18 = arith.mulf %8, %8 : vector<8x128xf32>
    %19 = arith.addf %17, %18 : vector<8x128xf32>
    %20 = arith.mulf %10, %10 : vector<8x128xf32>
    %21 = arith.mulf %12, %12 : vector<8x128xf32>
    %22 = arith.addf %20, %21 : vector<8x128xf32>
    %23 = arith.mulf %14, %14 : vector<8x128xf32>
    %24 = arith.addf %22, %23 : vector<8x128xf32>
    %25 = arith.mulf %4, %10 : vector<8x128xf32>
    %26 = arith.mulf %6, %12 : vector<8x128xf32>
    %27 = arith.addf %25, %26 : vector<8x128xf32>
    %28 = arith.mulf %8, %14 : vector<8x128xf32>
    %29 = arith.addf %27, %28 : vector<8x128xf32>
    %30 = math.sqrt %19 : vector<8x128xf32>
    %cst = arith.constant 9.99999996E-13 : f32
    %31 = vector.broadcast %cst : f32 to vector<8x128xf32>
    %32 = arith.maximumf %30, %31 : vector<8x128xf32>
    %33 = math.sqrt %24 : vector<8x128xf32>
    %cst_22 = arith.constant 9.99999996E-13 : f32
    %34 = vector.broadcast %cst_22 : f32 to vector<8x128xf32>
    %35 = arith.maximumf %33, %34 : vector<8x128xf32>
    %36 = arith.mulf %32, %35 : vector<8x128xf32>
    %37 = arith.divf %29, %36 : vector<8x128xf32>
    %c0_23 = arith.constant 0 : index
    %c0_24 = arith.constant 0 : index
    %38 = vector.load %arg5[%c0_23, %c0_24] : memref<8x128xf32, #tpu.memory_space<vmem>>, vector<8x128xf32>
    %cst_25 = arith.constant 1.000000e+00 : f32
    %39 = vector.broadcast %cst_25 : f32 to vector<8x128xf32>
    %40 = arith.subf %39, %37 : vector<8x128xf32>
    %41 = arith.addf %38, %40 : vector<8x128xf32>
    %c0_26 = arith.constant 0 : index
    %c0_27 = arith.constant 0 : index
    %42 = vector.load %arg5[%c0_26, %c0_27] : memref<8x128xf32, #tpu.memory_space<vmem>>, vector<8x128xf32>
    tpu.vector_store %arg5[%c0_26, %c0_27], %41 {strides = array<i32>} : memref<8x128xf32, #tpu.memory_space<vmem>>, vector<8x128xf32>,
    %c0_28 = arith.constant 0 : index
    %c0_29 = arith.constant 0 : index
    %43 = vector.load %arg6[%c0_28, %c0_29] : memref<8x128xf32, #tpu.memory_space<vmem>>, vector<8x128xf32>
    %44 = arith.addf %19, %24 : vector<8x128xf32>
    %cst_30 = arith.constant 2.000000e+00 : f32
    %45 = vector.broadcast %cst_30 : f32 to vector<8x128xf32>
    %46 = arith.mulf %45, %29 : vector<8x128xf32>
    %47 = arith.subf %44, %46 : vector<8x128xf32>
    %48 = arith.addf %43, %47 : vector<8x128xf32>
    %c0_31 = arith.constant 0 : index
    %c0_32 = arith.constant 0 : index
    %49 = vector.load %arg6[%c0_31, %c0_32] : memref<8x128xf32, #tpu.memory_space<vmem>>, vector<8x128xf32>
    tpu.vector_store %arg6[%c0_31, %c0_32], %48 {strides = array<i32>} : memref<8x128xf32, #tpu.memory_space<vmem>>, vector<8x128xf32>,
    %c0_33 = arith.constant 0 : index
    %c0_34 = arith.constant 0 : index
    %c0_35 = arith.constant 0 : index
    %50 = vector.load %arg7[%c0_33, %c0_34, %c0_35] : memref<3x8x128xf32, #tpu.memory_space<vmem>>, vector<1x8x128xf32>
    %51 = vector.shape_cast %50 : vector<1x8x128xf32> to vector<8x128xf32>
    %52 = arith.addf %51, %10 : vector<8x128xf32>
    %c0_36 = arith.constant 0 : index
    %c0_37 = arith.constant 0 : index
    %c0_38 = arith.constant 0 : index
    %53 = vector.load %arg7[%c0_36, %c0_37, %c0_38] : memref<3x8x128xf32, #tpu.memory_space<vmem>>, vector<1x8x128xf32>
    %54 = vector.shape_cast %53 : vector<1x8x128xf32> to vector<8x128xf32>
    %55 = vector.shape_cast %52 : vector<8x128xf32> to vector<1x8x128xf32>
    tpu.vector_store %arg7[%c0_36, %c0_37, %c0_38], %55 {strides = array<i32>} : memref<3x8x128xf32, #tpu.memory_space<vmem>>, vector<1x8x128xf32>,
    %c1_39 = arith.constant 1 : index
    %c0_40 = arith.constant 0 : index
    %c0_41 = arith.constant 0 : index
    %56 = vector.load %arg7[%c1_39, %c0_40, %c0_41] : memref<3x8x128xf32, #tpu.memory_space<vmem>>, vector<1x8x128xf32>
    %57 = vector.shape_cast %56 : vector<1x8x128xf32> to vector<8x128xf32>
    %58 = arith.addf %57, %12 : vector<8x128xf32>
    %c1_42 = arith.constant 1 : index
    %c0_43 = arith.constant 0 : index
    %c0_44 = arith.constant 0 : index
    %59 = vector.load %arg7[%c1_42, %c0_43, %c0_44] : memref<3x8x128xf32, #tpu.memory_space<vmem>>, vector<1x8x128xf32>
    %60 = vector.shape_cast %59 : vector<1x8x128xf32> to vector<8x128xf32>
    %61 = vector.shape_cast %58 : vector<8x128xf32> to vector<1x8x128xf32>
    tpu.vector_store %arg7[%c1_42, %c0_43, %c0_44], %61 {strides = array<i32>} : memref<3x8x128xf32, #tpu.memory_space<vmem>>, vector<1x8x128xf32>,
    %c2_45 = arith.constant 2 : index
    %c0_46 = arith.constant 0 : index
    %c0_47 = arith.constant 0 : index
    %62 = vector.load %arg7[%c2_45, %c0_46, %c0_47] : memref<3x8x128xf32, #tpu.memory_space<vmem>>, vector<1x8x128xf32>
    %63 = vector.shape_cast %62 : vector<1x8x128xf32> to vector<8x128xf32>
    %64 = arith.addf %63, %14 : vector<8x128xf32>
    %c2_48 = arith.constant 2 : index
    %c0_49 = arith.constant 0 : index
    %c0_50 = arith.constant 0 : index
    %65 = vector.load %arg7[%c2_48, %c0_49, %c0_50] : memref<3x8x128xf32, #tpu.memory_space<vmem>>, vector<1x8x128xf32>
    %66 = vector.shape_cast %65 : vector<1x8x128xf32> to vector<8x128xf32>
    %67 = vector.shape_cast %64 : vector<8x128xf32> to vector<1x8x128xf32>
    tpu.vector_store %arg7[%c2_48, %c0_49, %c0_50], %67 {strides = array<i32>} : memref<3x8x128xf32, #tpu.memory_space<vmem>>, vector<1x8x128xf32>,
    %c0_i32_51 = arith.constant 0 : i32
    %68 = arith.cmpi eq, %arg1, %c0_i32_51 : i32
    %69 = arith.extui %68 : i1 to i32
    %c0_i32_52 = arith.constant 0 : i32
    %70 = arith.cmpi ne, %69, %c0_i32_52 : i32
    scf.if %70 {
      %c0_53 = arith.constant 0 : index
      %c0_54 = arith.constant 0 : index
      %71 = vector.load %arg5[%c0_53, %c0_54] : memref<8x128xf32, #tpu.memory_space<vmem>>, vector<8x128xf32>
      %cst_55 = arith.constant dense<0.000000e+00> : vector<8xf32>
      %72 = vector.multi_reduction <add>, %71, %cst_55 [1] : vector<8x128xf32> to vector<8xf32>
      %73 = vector.shape_cast %72 : vector<8xf32> to vector<8x1xf32>
      %cst_56 = arith.constant dense<0.000000e+00> : vector<1xf32>
      %74 = vector.multi_reduction <add>, %73, %cst_56 [0] : vector<8x1xf32> to vector<1xf32>
      %75 = vector.shape_cast %74 : vector<1xf32> to vector<1x1xf32>
      %c0_57 = arith.constant 0 : index
      %c0_58 = arith.constant 0 : index
      %76 = vector.load %arg6[%c0_57, %c0_58] : memref<8x128xf32, #tpu.memory_space<vmem>>, vector<8x128xf32>
      %cst_59 = arith.constant dense<0.000000e+00> : vector<8xf32>
      %77 = vector.multi_reduction <add>, %76, %cst_59 [1] : vector<8x128xf32> to vector<8xf32>
      %78 = vector.shape_cast %77 : vector<8xf32> to vector<8x1xf32>
      %cst_60 = arith.constant dense<0.000000e+00> : vector<1xf32>
      %79 = vector.multi_reduction <add>, %78, %cst_60 [0] : vector<8x1xf32> to vector<1xf32>
      %80 = vector.shape_cast %79 : vector<1xf32> to vector<1x1xf32>
      %c0_61 = arith.constant 0 : index
      %c0_62 = arith.constant 0 : index
      %c0_63 = arith.constant 0 : index
      %81 = vector.load %arg7[%c0_61, %c0_62, %c0_63] : memref<3x8x128xf32, #tpu.memory_space<vmem>>, vector<1x8x128xf32>
      %82 = vector.shape_cast %81 : vector<1x8x128xf32> to vector<8x128xf32>
      %cst_64 = arith.constant dense<0.000000e+00> : vector<8xf32>
      %83 = vector.multi_reduction <add>, %82, %cst_64 [1] : vector<8x128xf32> to vector<8xf32>
      %84 = vector.shape_cast %83 : vector<8xf32> to vector<8x1xf32>
      %cst_65 = arith.constant dense<0.000000e+00> : vector<1xf32>
      %85 = vector.multi_reduction <add>, %84, %cst_65 [0] : vector<8x1xf32> to vector<1xf32>
      %86 = vector.shape_cast %85 : vector<1xf32> to vector<1x1xf32>
      %cst_66 = arith.constant 3.906250e-03 : f32
      %87 = vector.broadcast %cst_66 : f32 to vector<1x1xf32>
      %88 = arith.mulf %86, %87 : vector<1x1xf32>
      %c1_67 = arith.constant 1 : index
      %c0_68 = arith.constant 0 : index
      %c0_69 = arith.constant 0 : index
      %89 = vector.load %arg7[%c1_67, %c0_68, %c0_69] : memref<3x8x128xf32, #tpu.memory_space<vmem>>, vector<1x8x128xf32>
      %90 = vector.shape_cast %89 : vector<1x8x128xf32> to vector<8x128xf32>
      %cst_70 = arith.constant dense<0.000000e+00> : vector<8xf32>
      %91 = vector.multi_reduction <add>, %90, %cst_70 [1] : vector<8x128xf32> to vector<8xf32>
      %92 = vector.shape_cast %91 : vector<8xf32> to vector<8x1xf32>
      %cst_71 = arith.constant dense<0.000000e+00> : vector<1xf32>
      %93 = vector.multi_reduction <add>, %92, %cst_71 [0] : vector<8x1xf32> to vector<1xf32>
      %94 = vector.shape_cast %93 : vector<1xf32> to vector<1x1xf32>
      %cst_72 = arith.constant 3.906250e-03 : f32
      %95 = vector.broadcast %cst_72 : f32 to vector<1x1xf32>
      %96 = arith.mulf %94, %95 : vector<1x1xf32>
      %c2_73 = arith.constant 2 : index
      %c0_74 = arith.constant 0 : index
      %c0_75 = arith.constant 0 : index
      %97 = vector.load %arg7[%c2_73, %c0_74, %c0_75] : memref<3x8x128xf32, #tpu.memory_space<vmem>>, vector<1x8x128xf32>
      %98 = vector.shape_cast %97 : vector<1x8x128xf32> to vector<8x128xf32>
      %cst_76 = arith.constant dense<0.000000e+00> : vector<8xf32>
      %99 = vector.multi_reduction <add>, %98, %cst_76 [1] : vector<8x128xf32> to vector<8xf32>
      %100 = vector.shape_cast %99 : vector<8xf32> to vector<8x1xf32>
      %cst_77 = arith.constant dense<0.000000e+00> : vector<1xf32>
      %101 = vector.multi_reduction <add>, %100, %cst_77 [0] : vector<8x1xf32> to vector<1xf32>
      %102 = vector.shape_cast %101 : vector<1xf32> to vector<1x1xf32>
      %cst_78 = arith.constant 3.906250e-03 : f32
      %103 = vector.broadcast %cst_78 : f32 to vector<1x1xf32>
      %104 = arith.mulf %102, %103 : vector<1x1xf32>
      %105 = arith.subf %88, %96 : vector<1x1xf32>
      %106 = arith.mulf %105, %105 : vector<1x1xf32>
      %107 = arith.subf %88, %104 : vector<1x1xf32>
      %108 = arith.mulf %107, %107 : vector<1x1xf32>
      %109 = arith.subf %104, %96 : vector<1x1xf32>
      %110 = arith.mulf %109, %109 : vector<1x1xf32>
      %111 = arith.mulf %106, %106 : vector<1x1xf32>
      %112 = arith.mulf %108, %108 : vector<1x1xf32>
      %113 = arith.addf %111, %112 : vector<1x1xf32>
      %114 = arith.mulf %110, %110 : vector<1x1xf32>
      %115 = arith.addf %113, %114 : vector<1x1xf32>
      %116 = math.sqrt %115 : vector<1x1xf32>
      %117 = tpu.iota {dimensions = array<i32: 1>} : vector<8x128xi32>
      %c0_i32_79 = arith.constant 0 : i32
      %118 = vector.broadcast %c0_i32_79 : i32 to vector<8x128xi32>
      %119 = arith.cmpi eq, %117, %118 : vector<8x128xi32>
      %c1_i32 = arith.constant 1 : i32
      %120 = vector.broadcast %c1_i32 : i32 to vector<8x128xi32>
      %121 = arith.cmpi eq, %117, %120 : vector<8x128xi32>
      %c2_i32 = arith.constant 2 : i32
      %122 = vector.broadcast %c2_i32 : i32 to vector<8x128xi32>
      %123 = arith.cmpi eq, %117, %122 : vector<8x128xi32>
      %cst_80 = arith.constant 0.000000e+00 : f32
      %124 = vector.shape_cast %116 : vector<1x1xf32> to vector<1x1xf32>
      %125 = vector.broadcast %124 : vector<1x1xf32> to vector<8x128xf32>
      %126 = vector.broadcast %cst_80 : f32 to vector<8x128xf32>
      %127 = arith.select %123, %125, %126 : vector<8x128xi1>, vector<8x128xf32>
      %128 = vector.shape_cast %80 : vector<1x1xf32> to vector<1x1xf32>
      %129 = vector.broadcast %128 : vector<1x1xf32> to vector<8x128xf32>
      %130 = arith.select %121, %129, %127 : vector<8x128xi1>, vector<8x128xf32>
      %131 = vector.shape_cast %75 : vector<1x1xf32> to vector<1x1xf32>
      %132 = vector.broadcast %131 : vector<1x1xf32> to vector<8x128xf32>
      %133 = arith.select %119, %132, %130 : vector<8x128xi1>, vector<8x128xf32>
      %c0_81 = arith.constant 0 : index
      %c0_82 = arith.constant 0 : index
      %c0_83 = arith.constant 0 : index
      %134 = vector.load %arg4[%c0_81, %c0_82, %c0_83] : memref<1x8x128xf32, #tpu.memory_space<vmem>>, vector<1x8x128xf32>
      %135 = vector.shape_cast %134 : vector<1x8x128xf32> to vector<8x128xf32>
      %136 = vector.shape_cast %133 : vector<8x128xf32> to vector<1x8x128xf32>
      tpu.vector_store %arg4[%c0_81, %c0_82, %c0_83], %136 {strides = array<i32>} : memref<1x8x128xf32, #tpu.memory_space<vmem>>, vector<1x8x128xf32>,
    } else {
    }
    return
  }
  func.func @transform_0(%arg0: i32, %arg1: i32) -> (i32, i32, i32, i32) {
    %c0_i32 = arith.constant 0 : i32
    %c0_i32_0 = arith.constant 0 : i32
    %c0_i32_1 = arith.constant 0 : i32
    return %arg0, %c0_i32, %arg1, %c0_i32_0 : i32, i32, i32, i32
  }
  func.func @transform_1(%arg0: i32, %arg1: i32) -> (i32, i32, i32, i32) {
    %c0_i32 = arith.constant 0 : i32
    %c0_i32_0 = arith.constant 0 : i32
    %c0_i32_1 = arith.constant 0 : i32
    return %arg0, %c0_i32, %arg1, %c0_i32_0 : i32, i32, i32, i32
  }
  func.func @transform_2(%arg0: i32, %arg1: i32) -> (i32, i32, i32) {
    %c0_i32 = arith.constant 0 : i32
    %c0_i32_0 = arith.constant 0 : i32
    %c0_i32_1 = arith.constant 0 : i32
    return %arg0, %c0_i32, %c0_i32_0 : i32, i32, i32
  }
}

</mosaic_0001>

<bundles_post_ra>
// kernel: color_loss_angular.1
= control target key start
LH: loop header
LB: loop body
LE: loop exit
PB: predicated region body
PF: predicated region fallthrough
CT: control target
= control target key end

     0   :  { %s519_s9 = smov 0   ;;  %s521_s10 = smov 0   ;;  %s559_s0 = inlined_call_operand.vmem [shape: f32[2,3,8,128], index: 0, kind: input, shape index: {}]   ;;  %s560_s1 = inlined_call_operand.vmem [shape: f32[2,3,8,128], index: 1, kind: input, shape index: {}]   ;;  %s561_s2 = inlined_call_operand.vmem [shape: f32[2,8,128], index: 2, kind: output, shape index: {}]  }
   0x1   :  { %s523_s11 = smov 0  }
   0x2 LB: > { %s24_s12 = sadd.s32 1, %s498_s10  ;;  %p437_p0 = scmp.ge.s32.totalorder %s502_s11, 1  ;;  %s502_s11 = sphi %s523_s11, %s12_s11   ;;  %s498_s10 = sphi %s521_s10, %s563_s10   ;;  %s494_s9 = sphi %s519_s9, %s562_s9  }
   0x3   : > { %p26_p1 = scmp.ge.s32.totalorder %s24_s12, 2  ;;  %p144_p2 = scmp.lt.s32.totalorder %s502_s11, 3 }
   0x5   : > { %s565_s12 = smov (%p26_p1, %s24_s12), 0  ;;  %p145_p3 = pnand %p437_p0, %p144_p2 }
   0x6   : > { %p176_p4 = scmp.lt.s32.totalorder (!%p145_p3), %s494_s9, 1 }
   0x7   : > { %148 = sbr.rel (%p145_p3) target bundleno = 217 (0xd9), region = 28 }
   0xe   : > { %s567_s9 = smov (!%p176_p4, %s494_s9), 1 }
   0xf   : > { %s447_s13 = smul.u32 24, %s567_s9  ;;  %s440_s20 = sshll.u32 %s567_s9, 3 }
  0x10   : > { %s195_s23 = scalar_lea.vmem %s561_s2, %s440_s20 }
  0x11   : > { %s191_s16 = scalar_lea.vmem %s560_s1, %s447_s13  ;;  %s183_s19 = scalar_lea.vmem %s559_s0, %s447_s13 }
  0x12   : > { %v210_v0 = vld [vmem:[%s191_s16] sm:$0xff]  ;;  %v444_v2 = vld [vmem:[%s191_s16 + $0x10] sm:$0xff]  ;;  %v443_v7 = vld [vmem:[%s191_s16 + $0x8] sm:$0xff] }
  0x13   : > { %v205_v1 = vld [vmem:[%s183_s19] sm:$0xff]  ;;  %292 = vadd.xlane.f32.xlu0 %v210_v0  ;;  %v220_v4 = vmul.f32 %v210_v0, %v210_v0  ;;  %312 = vadd.xlane.f32.xlu1 %v444_v2  ;;  %v442_v6 = vld [vmem:[%s183_s19 + $0x10] sm:$0xff]  ;;  %v441_v8 = vld [vmem:[%s183_s19 + $0x8] sm:$0xff]  ;;  %v223_v9 = vmul.f32 %v444_v2, %v444_v2  ;;  %v221_v10 = vmul.f32 %v443_v7, %v443_v7 }
  0x14   : > { %v215_v3 = vmul.f32 %v205_v1, %v205_v1  ;;  %v225_v5 = vmul.f32 %v210_v0, %v205_v1  ;;  %v218_v11 = vmul.f32 %v442_v6, %v442_v6  ;;  %v228_v12 = vmul.f32 %v444_v2, %v442_v6 }
  0x15   : > { %v216_v13 = vmul.f32 %v441_v8, %v441_v8  ;;  %v226_v14 = vmul.f32 %v443_v7, %v441_v8  ;;  %v222_v15 = vadd.f32 %v221_v10, %v220_v4 }
  0x17   : > { %302 = vadd.xlane.f32.xlu0 %v443_v7  ;;  %v217_v16 = vadd.f32 %v216_v13, %v215_v3  ;;  %v227_v17 = vadd.f32 %v226_v14, %v225_v5  ;;  %v224_v18 = vadd.f32 %v223_v9, %v222_v15 }
  0x19   : > { %v219_v19 = vadd.f32 %v218_v11, %v217_v16  ;;  %v229_v20 = vadd.f32 %v228_v12, %v227_v17  ;;  %472 = vrsqrt.f32 %v224_v18  ;;  %vm240_vm0 = vcmp.eq.f32.partialorder %v224_v18, inf }
  0x1a   : > { %v243_v25 = vand.u32 2147483648, %v224_v18  ;;  %vm242_vm2 = vcmp.eq.f32.partialorder %v224_v18, 0.0  ;;  %v339_v16 = vlaneseq }
  0x1b   : > { %v254_v21 = vadd.f32 %v224_v18, %v219_v19  ;;  %v255_v22 = vmul.f32 2.0, %v229_v20  ;;  %474 = vrsqrt.f32 %v219_v19  ;;  %vm232_vm1 = vcmp.eq.f32.partialorder %v219_v19, inf }
  0x1c   : > { %v235_v27 = vand.u32 2147483648, %v219_v19  ;;  %vm234_vm3 = vcmp.eq.f32.partialorder %v219_v19, 0.0 }
  0x1d   : > { %v256_v23 = vsub.f32 %v254_v21, %v255_v22  ;;  %v340_v21 = vand.u32 127, %v339_v16 }
  0x1f   : > { %283 = vadd.xlane.f32.xlu1 %v256_v23  ;;  %vm343_vm6 = vcmp.eq.s32.totalorder %v340_v21, 2  ;;  %vm342_vm7 = vcmp.eq.s32.totalorder %v340_v21, 1  ;;  %vm341_vm8 = vcmp.eq.s32.totalorder %v340_v21, 0 }
  0x23   : > { %v473_v24 = vpop.eup %472 }
  0x24   : > { %v239_v28 = vmul.f32 %v473_v24, %v224_v18 }
  0x25   : > { %v475_v26 = vpop.eup %474 }
  0x26   : > { %v231_v29 = vmul.f32 %v475_v26, %v219_v19  ;;  %v241_v30 = vsel %vm240_vm0, %v224_v18, %v239_v28 }
  0x27   : > { %v244_v32 = vsel %vm242_vm2, %v243_v25, %v241_v30 }
  0x28   : > { %v233_v31 = vsel %vm232_vm1, %v219_v19, %v231_v29  ;;  %v245_v34 = vmax.f32 %v244_v32, 1e-12 }
  0x29   : > { %v236_v33 = vsel %vm234_vm3, %v235_v27, %v233_v31 }
  0x2a   : > { %v237_v35 = vmax.f32 %v236_v33, 1e-12 }
  0x2c   : > { %v246_v36 = vmul.f32 %v245_v34, %v237_v35 }
  0x2e   : > { %476 = vrcp.f32 %v246_v36 }
  0x38   : > { %v477_v37 = vpop.eup %476 }
  0x39   : > { %v248_v38 = vmul.f32 %v477_v37, %v229_v20 }
  0x3b   : > { %v250_v39 = vsub.f32 1.0, %v248_v38 }
  0x3d   : > { %274 = vadd.xlane.f32.xlu0 %v250_v39 }
  0xa0   : > { %v293_v40 = vpop.xlane.xlu0 %292  ;;  %v313_v41 = vpop.xlane.xlu1 %312 }
  0xa1   : > { %v294_v42 = vrot.slane %v293_v40, 4  ;;  %v314_v43 = vrot.slane %v313_v41, 4 }
  0xa3   : > { %v295_v44 = vadd.f32 %v294_v42, %v293_v40  ;;  %v315_v45 = vadd.f32 %v314_v43, %v313_v41 }
  0xa4   : > { %v303_v46 = vpop.xlane.xlu0 %302 }
  0xa5   : > { %v296_v47 = vrot.slane %v295_v44, 2  ;;  %v316_v48 = vrot.slane %v315_v45, 2  ;;  %v304_v49 = vrot.slane %v303_v46, 4 }
  0xa7   : > { %v297_v50 = vadd.f32 %v296_v47, %v295_v44  ;;  %v317_v51 = vadd.f32 %v316_v48, %v315_v45  ;;  %v305_v52 = vadd.f32 %v304_v49, %v303_v46 }
  0xa9   : > { %v298_v53 = vrot.slane %v297_v50, 1  ;;  %v318_v54 = vrot.slane %v317_v51, 1  ;;  %v306_v55 = vrot.slane %v305_v52, 2 }
  0xab   : > { %v299_v56 = vadd.f32 %v298_v53, %v297_v50  ;;  %v319_v57 = vadd.f32 %v318_v54, %v317_v51  ;;  %v307_v58 = vadd.f32 %v306_v55, %v305_v52 }
  0xac   : > { %v284_v11 = vpop.xlane.xlu1 %283 }
  0xad   : > { %v300_v59 = vmul.f32 0.00390625, %v299_v56  ;;  %v320_v60 = vmul.f32 0.00390625, %v319_v57  ;;  %v308_v61 = vrot.slane %v307_v58, 1  ;;  %v285_v12 = vrot.slane %v284_v11, 4 }
  0xaf   : > { %v323_v62 = vsub.f32 %v300_v59, %v320_v60  ;;  %v309_v63 = vadd.f32 %v308_v61, %v307_v58  ;;  %v286_v13 = vadd.f32 %v285_v12, %v284_v11 }
  0xb1   : > { %v310_v0 = vmul.f32 0.00390625, %v309_v63  ;;  %v324_v1 = vmul.f32 %v323_v62, %v323_v62  ;;  %v287_v14 = vrot.slane %v286_v13, 2 }
  0xb3   : > { %v321_v2 = vsub.f32 %v300_v59, %v310_v0  ;;  %v325_v3 = vsub.f32 %v320_v60, %v310_v0  ;;  %v328_v6 = vmul.f32 %v324_v1, %v324_v1  ;;  %v288_v18 = vadd.f32 %v287_v14, %v286_v13 }
  0xb5   : > { %v322_v4 = vmul.f32 %v321_v2, %v321_v2  ;;  %v326_v5 = vmul.f32 %v325_v3, %v325_v3  ;;  %v289_v25 = vrot.slane %v288_v18, 1 }
  0xb7   : > { %v327_v7 = vmul.f32 %v322_v4, %v322_v4  ;;  %v330_v8 = vmul.f32 %v326_v5, %v326_v5  ;;  %v290_v29 = vadd.f32 %v289_v25, %v288_v18 }
  0xb9   : > { %v329_v9 = vadd.f32 %v328_v6, %v327_v7 }
  0xbb   : > { %v331_v10 = vadd.f32 %v330_v8, %v329_v9 }
  0xbd   : > { %478 = vrsqrt.f32 %v331_v10  ;;  %vm334_vm4 = vcmp.eq.f32.partialorder %v331_v10, inf  ;;  %v337_v24 = vand.u32 2147483648, %v331_v10  ;;  %vm336_vm5 = vcmp.eq.f32.partialorder %v331_v10, 0.0 }
  0xc7   : > { %v479_v15 = vpop.eup %478 }
  0xc8   : > { %v333_v17 = vmul.f32 %v479_v15, %v331_v10 }
  0xca   : > { %v275_v19 = vpop.xlane.xlu0 %274  ;;  %v335_v22 = vsel %vm334_vm4, %v331_v10, %v333_v17 }
  0xcb   : > { %v276_v20 = vrot.slane %v275_v19, 4  ;;  %v338_v27 = vsel %vm336_vm5, %v337_v24, %v335_v22 }
  0xcc   : > { %v344_v30 = vsel %vm343_vm6, %v338_v27, 0.0 }
  0xcd   : > { %v277_v23 = vadd.f32 %v276_v20, %v275_v19  ;;  %v345_v33 = vsel %vm342_vm7, %v290_v29, %v344_v30 }
  0xcf   : > { %v278_v26 = vrot.slane %v277_v23, 2 }
  0xd1   : > { %v279_v28 = vadd.f32 %v278_v26, %v277_v23 }
  0xd3   : > { %v280_v31 = vrot.slane %v279_v28, 1 }
  0xd5   : > { %v281_v32 = vadd.f32 %v280_v31, %v279_v28 }
  0xd7   : > { %v346_v34 = vsel %vm341_vm8, %v281_v32, %v345_v33 }
  0xd8   : > { %347 = vst [vmem:[%s195_s23] sm:$0xff] %v346_v34 }
  0xd9 PF: > { %s12_s11 = sadd.s32 1, %s502_s11   ;;  %s562_s9 = smov %s498_s10 }
  0xda   : > { %p9_p5 = scmp.ge.s32.totalorder %s12_s11, 4   ;;  %s563_s10 = smov %s565_s12 }
  0xdc   :  { %11 = sbr.rel (!%p9_p5) target bundleno = 2 (0x2), region = 75 }

</bundles_post_ra>
